<compile_context>
chip_gen: v5e
topology: v5e:2x2
jax: 0.10.0
libtpu: 0.0.40
codegen_flags: <defaults>
</compile_context>

<pallas_src>
import functools

import numpy as np
import jax
import jax.numpy as jnp
from jax.experimental import pallas as pl
from jax.experimental.pallas import tpu as pltpu


# ----------------------------------------------------------------------------
# Kernel 1: block-mask generation for all N batches in one grid step.
# ----------------------------------------------------------------------------
def _shift_zero(a, axis, s):
    """shifted[..., i, ...] = a[..., i + s, ...], zero-filled out of range."""
    if s == 0:
        return a
    zero_shape = list(a.shape)
    zero_shape[axis] = abs(s)
    zeros = jnp.zeros(zero_shape, a.dtype)
    if s > 0:
        body = jax.lax.slice_in_dim(a, s, a.shape[axis], axis=axis)
        return jnp.concatenate([body, zeros], axis=axis)
    body = jax.lax.slice_in_dim(a, 0, a.shape[axis] + s, axis=axis)
    return jnp.concatenate([zeros, body], axis=axis)


def _make_mask_kernel(N, H, W, block_size):
    pad = block_size // 2
    numel = float(N * H * W)

    def kernel(u_ref, gamma_ref, mask_ref):
        gamma = gamma_ref[0]
        # Bernoulli(gamma) field over (N, H, W).
        bern = (u_ref[...] < gamma).astype(jnp.float32)

        # Separable max-pool (k=block_size, stride=1, "same" padding) on the
        # 0/1 field: shifted copies max-reduced, zero fill is equivalent to
        # the implicit padding because values are non-negative.
        pooled_h = bern
        for s in range(1, pad + 1):
            pooled_h = jnp.maximum(
                pooled_h,
                jnp.maximum(_shift_zero(bern, 1, s), _shift_zero(bern, 1, -s)))
        pooled = pooled_h
        for s in range(1, pad + 1):
            pooled = jnp.maximum(
                pooled,
                jnp.maximum(_shift_zero(pooled_h, 2, s),
                            _shift_zero(pooled_h, 2, -s)))

        keep = 1.0 - pooled                      # block_mask, (N, H, W)
        total = jnp.sum(keep)
        # numel / sum normalization (clamped: PyTorch would emit inf/nan if
        # every position were dropped).
        scale = numel / jnp.maximum(total, 1.0)
        # Fold the normalization scale into the mask (exact for 0/1 masks).
        mask_ref[...] = keep * scale

    return kernel


# ----------------------------------------------------------------------------
# Kernel 2: lane-dense elementwise apply (the hot path touching all of x).
# ----------------------------------------------------------------------------
def _apply_kernel(x_ref, m_ref, o_ref):
    # x_ref: (1, tc, H*W); m_ref: (1, 1, H*W) -> broadcast over channels.
    o_ref[...] = (x_ref[...] * m_ref[...]).astype(o_ref.dtype)


def _pick_channel_tile(C, HW, itemsize, budget_bytes=4 * 1024 * 1024):
    """Largest channel tile whose x-block fits a per-block VMEM budget.

    Keeps the block's second-to-last dim either == C (full dim) or a multiple
    of 8 so the (8, 128) layout constraint is respected.
    """
    if C * HW * itemsize <= budget_bytes:
        return C
    cap = max(8, budget_bytes // (HW * itemsize))
    best = None
    tc = 8
    while tc <= min(C, cap):
        if C % tc == 0:
            best = tc
        tc += 8
    return best if best is not None else C


@functools.partial(jax.jit, static_argnames=("block_size",))
def _dropblock_forward(x, gamma_arr, seed, block_size):
    N, C, H, W = x.shape
    HW = H * W

    # Uniform field for the Bernoulli draw (shared across channels, per batch).
    key = jax.random.PRNGKey(seed)
    u = jax.random.uniform(key, (N, H, W), dtype=jnp.float32)

    # --- Kernel 1: scaled block mask, all batches in one grid step ----------
    mask_scaled = pl.pallas_call(
        _make_mask_kernel(N, H, W, block_size),
        out_shape=jax.ShapeDtypeStruct((N, H, W), jnp.float32),
        grid=(1,),
        in_specs=[
            pl.BlockSpec((N, H, W), lambda i: (0, 0, 0)),   # uniform field
            pl.BlockSpec(memory_space=pltpu.SMEM),          # gamma scalar
        ],
        out_specs=pl.BlockSpec((N, H, W), lambda i: (0, 0, 0)),
        compiler_params=pltpu.CompilerParams(
            dimension_semantics=("arbitrary",)),
    )(u, gamma_arr)

    # --- Kernel 2: lane-dense apply -----------------------------------------
    xf = x.reshape(N, C, HW)                     # last dim = H*W (256 -> lane-dense)
    mf = mask_scaled.reshape(N, 1, HW)

    tc = _pick_channel_tile(C, HW, x.dtype.itemsize)
    out = pl.pallas_call(
        _apply_kernel,
        out_shape=jax.ShapeDtypeStruct((N, C, HW), x.dtype),
        grid=(N, C // tc),
        in_specs=[
            pl.BlockSpec((1, tc, HW), lambda n, c: (n, c, 0)),   # x tile
            pl.BlockSpec((1, 1, HW), lambda n, c: (n, 0, 0)),    # scaled mask
        ],
        out_specs=pl.BlockSpec((1, tc, HW), lambda n, c: (n, c, 0)),
        compiler_params=pltpu.CompilerParams(
            dimension_semantics=("parallel", "parallel"),
            vmem_limit_bytes=32 * 1024 * 1024),
    )(xf, mf)
    return out.reshape(N, C, H, W)


# ----------------------------------------------------------------------------
# Module-level wrappers mirroring the PyTorch classes (no learned parameters).
# ----------------------------------------------------------------------------
class DropBlock2D:
    def __init__(self, drop_prob=0.0, block_size=3):
        assert block_size % 2 == 1, "odd block_size assumed (matches typical use)"
        self.drop_prob = float(drop_prob)
        self.block_size = int(block_size)
        self.training = True

    def __call__(self, x, seed=0):
        if (not self.training) or self.drop_prob == 0.0:
            return x  # identity path, exactly as in PyTorch DropBlock2D
        gamma = self.drop_prob / (self.block_size ** 2)
        gamma_arr = jnp.asarray([gamma], dtype=jnp.float32)
        return _dropblock_forward(x, gamma_arr, jnp.int32(seed), self.block_size)


class LinearScheduler:
    """Pallas port of LinearScheduler: forward(x) == dropblock(x)."""

    def __init__(self, dropblock, start_value, stop_value, nr_steps):
        self.dropblock = dropblock
        self.i = 0
        self.drop_values = np.linspace(start=start_value, stop=stop_value,
                                       num=int(nr_steps))

    def __call__(self, x, seed=0):
        return self.dropblock(x, seed)

    forward = __call__

    def step(self):
        if self.i < len(self.drop_values):
            self.dropblock.drop_prob = float(self.drop_values[self.i])
        self.i += 1


if __name__ == "__main__":
    N, C, H, W = 2, 4, 16, 16
    x = jax.random.normal(jax.random.PRNGKey(0), (N, C, H, W), dtype=jnp.float32)
    seed = 42

    sched = LinearScheduler(
        DropBlock2D(drop_prob=0.0, block_size=3),
        start_value=0.0, stop_value=0.25, nr_steps=5,
    )

    # drop_prob starts at 0 -> identity path (same as PyTorch before step()).
    y0 = jax.block_until_ready(sched(x, seed=seed))
    assert jnp.array_equal(y0, x)

    # Advance the schedule so the DropBlock kernels actually run.
    for _ in range(5):
        sched.step()

    y = jax.block_until_ready(sched(x, seed=seed))
    assert y.shape == x.shape and y.dtype == x.dtype
    assert bool(jnp.all(jnp.isfinite(y)))

    # Pure-JAX reference (same uniform field, same math) for correctness.
    k = sched.dropblock.block_size
    p = k // 2
    gamma = jnp.float32(sched.dropblock.drop_prob / (k ** 2))
    u = jax.random.uniform(jax.random.PRNGKey(seed), (N, H, W), dtype=jnp.float32)
    bern = (u < gamma).astype(jnp.float32)
    pooled = jax.lax.reduce_window(bern, jnp.float32(0), jax.lax.max,
                                   (1, k, k), (1, 1, 1),
                                   [(0, 0), (p, p), (p, p)])
    keep = 1.0 - pooled
    scale = keep.size / jnp.maximum(jnp.sum(keep), 1.0)
    y_ref = x * keep[:, None, :, :] * scale
    assert jnp.allclose(y, y_ref, rtol=1e-5, atol=1e-6)

    print("KERNEL_OK")
</pallas_src>

<mosaic_0001>
module attributes {stable_mosaic.version = 11 : i64} {
  func.func @kernel(%arg0: i32, %arg1: memref<2x16x16xf32, #tpu.memory_space<vmem>>, %arg2: memref<1xf32, #tpu.memory_space<smem>>, %arg3: memref<2x16x16xf32, #tpu.memory_space<vmem>>) attributes {dimension_semantics = [#tpu.dimension_semantics<arbitrary>], iteration_bounds = array<i64: 1>, scalar_prefetch = 0 : i64, scratch_operands = 0 : i64, tpu.core_type = #tpu.core_type<tc>, window_params = [{pipeline_mode = #tpu.pipeline_mode<synchronous>, transform_indices = @transform_0, window_bounds = array<i64: 2, 16, 16>}, {transform_indices = @transform_1, window_bounds = array<i64: 1>}, {pipeline_mode = #tpu.pipeline_mode<synchronous>, transform_indices = @transform_2, window_bounds = array<i64: 2, 16, 16>}]} {
    %c0 = arith.constant 0 : index
    %0 = memref.load %arg2[%c0] : memref<1xf32, #tpu.memory_space<smem>>
    %c0_0 = arith.constant 0 : index
    %c0_1 = arith.constant 0 : index
    %c0_2 = arith.constant 0 : index
    %1 = vector.load %arg1[%c0_0, %c0_1, %c0_2] : memref<2x16x16xf32, #tpu.memory_space<vmem>>, vector<2x16x16xf32>
    %2 = vector.broadcast %0 : f32 to vector<2x16x16xf32>
    %3 = arith.cmpf olt, %1, %2 : vector<2x16x16xf32>
    %4 = arith.extui %3 : vector<2x16x16xi1> to vector<2x16x16xi32>
    %5 = arith.sitofp %4 : vector<2x16x16xi32> to vector<2x16x16xf32>
    %cst = arith.constant 0.000000e+00 : f32
    %6 = vector.broadcast %cst : f32 to vector<2x1x16xf32>
    %7 = vector.extract_strided_slice %5 {offsets = [0, 1, 0], sizes = [2, 15, 16], strides = [1, 1, 1]} : vector<2x16x16xf32> to vector<2x15x16xf32>
    %8 = tpu.concatenate %7, %6 in 1 : vector<2x15x16xf32>, vector<2x1x16xf32> -> vector<2x16x16xf32>
    %cst_3 = arith.constant 0.000000e+00 : f32
    %9 = vector.broadcast %cst_3 : f32 to vector<2x1x16xf32>
    %10 = vector.extract_strided_slice %5 {offsets = [0, 0, 0], sizes = [2, 15, 16], strides = [1, 1, 1]} : vector<2x16x16xf32> to vector<2x15x16xf32>
    %11 = tpu.concatenate %9, %10 in 1 : vector<2x1x16xf32>, vector<2x15x16xf32> -> vector<2x16x16xf32>
    %12 = arith.maximumf %8, %11 : vector<2x16x16xf32>
    %13 = arith.maximumf %5, %12 : vector<2x16x16xf32>
    %cst_4 = arith.constant 0.000000e+00 : f32
    %14 = vector.broadcast %cst_4 : f32 to vector<2x16x1xf32>
    %15 = vector.extract_strided_slice %13 {offsets = [0, 0, 1], sizes = [2, 16, 15], strides = [1, 1, 1]} : vector<2x16x16xf32> to vector<2x16x15xf32>
    %16 = tpu.concatenate %15, %14 in 2 : vector<2x16x15xf32>, vector<2x16x1xf32> -> vector<2x16x16xf32>
    %cst_5 = arith.constant 0.000000e+00 : f32
    %17 = vector.broadcast %cst_5 : f32 to vector<2x16x1xf32>
    %18 = vector.extract_strided_slice %13 {offsets = [0, 0, 0], sizes = [2, 16, 15], strides = [1, 1, 1]} : vector<2x16x16xf32> to vector<2x16x15xf32>
    %19 = tpu.concatenate %17, %18 in 2 : vector<2x16x1xf32>, vector<2x16x15xf32> -> vector<2x16x16xf32>
    %20 = arith.maximumf %16, %19 : vector<2x16x16xf32>
    %21 = arith.maximumf %13, %20 : vector<2x16x16xf32>
    %cst_6 = arith.constant 1.000000e+00 : f32
    %22 = vector.broadcast %cst_6 : f32 to vector<2x16x16xf32>
    %23 = arith.subf %22, %21 : vector<2x16x16xf32>
    %24 = vector.shape_cast %23 : vector<2x16x16xf32> to vector<1x2x16x16xf32>
    %cst_7 = arith.constant dense<0.000000e+00> : vector<1xf32>
    %25 = vector.multi_reduction <add>, %24, %cst_7 [1, 2, 3] : vector<1x2x16x16xf32> to vector<1xf32>
    %26 = vector.shape_cast %25 : vector<1xf32> to vector<1x1x1x1xf32>
    %27 = vector.extract %26[0, 0, 0, 0] : f32 from vector<1x1x1x1xf32>
    %cst_8 = arith.constant 1.000000e+00 : f32
    %28 = arith.maximumf %27, %cst_8 : f32
    %cst_9 = arith.constant 5.120000e+02 : f32
    %29 = arith.divf %cst_9, %28 : f32
    %30 = vector.broadcast %29 : f32 to vector<2x16x16xf32>
    %31 = arith.mulf %23, %30 : vector<2x16x16xf32>
    %c0_10 = arith.constant 0 : index
    %c0_11 = arith.constant 0 : index
    %c0_12 = arith.constant 0 : index
    %32 = vector.load %arg3[%c0_10, %c0_11, %c0_12] : memref<2x16x16xf32, #tpu.memory_space<vmem>>, vector<2x16x16xf32>
    tpu.vector_store %arg3[%c0_10, %c0_11, %c0_12], %31 {strides = array<i32>} : memref<2x16x16xf32, #tpu.memory_space<vmem>>, vector<2x16x16xf32>,
    return
  }
  func.func @transform_0(%arg0: i32) -> (i32, i32, i32) {
    %c0_i32 = arith.constant 0 : i32
    %c0_i32_0 = arith.constant 0 : i32
    %c0_i32_1 = arith.constant 0 : i32
    %c0_i32_2 = arith.constant 0 : i32
    return %c0_i32, %c0_i32_0, %c0_i32_1 : i32, i32, i32
  }
  func.func @transform_1(%arg0: i32) -> i32 {
    %c0_i32 = arith.constant 0 : i32
    %c0_i32_0 = arith.constant 0 : i32
    return %c0_i32 : i32
  }
  func.func @transform_2(%arg0: i32) -> (i32, i32, i32) {
    %c0_i32 = arith.constant 0 : i32
    %c0_i32_0 = arith.constant 0 : i32
    %c0_i32_1 = arith.constant 0 : i32
    %c0_i32_2 = arith.constant 0 : i32
    return %c0_i32, %c0_i32_0, %c0_i32_1 : i32, i32, i32
  }
}

module attributes {stable_mosaic.version = 11 : i64} {
  func.func @_apply_kernel(%arg0: i32, %arg1: i32, %arg2: memref<1x4x256xf32, #tpu.memory_space<vmem>>, %arg3: memref<1x1x256xf32, #tpu.memory_space<vmem>>, %arg4: memref<1x4x256xf32, #tpu.memory_space<vmem>>) attributes {dimension_semantics = [#tpu.dimension_semantics<parallel>, #tpu.dimension_semantics<parallel>], iteration_bounds = array<i64: 2, 1>, scalar_prefetch = 0 : i64, scratch_operands = 0 : i64, tpu.core_type = #tpu.core_type<tc>, window_params = [{transform_indices = @transform_0, window_bounds = array<i64: 1, 4, 256>}, {transform_indices = @transform_1, window_bounds = array<i64: 1, 1, 256>}, {transform_indices = @transform_2, window_bounds = array<i64: 1, 4, 256>}]} {
    %c0 = arith.constant 0 : index
    %c0_0 = arith.constant 0 : index
    %c0_1 = arith.constant 0 : index
    %0 = vector.load %arg2[%c0, %c0_0, %c0_1] : memref<1x4x256xf32, #tpu.memory_space<vmem>>, vector<1x4x256xf32>
    %c0_2 = arith.constant 0 : index
    %c0_3 = arith.constant 0 : index
    %c0_4 = arith.constant 0 : index
    %1 = vector.load %arg3[%c0_2, %c0_3, %c0_4] : memref<1x1x256xf32, #tpu.memory_space<vmem>>, vector<1x1x256xf32>
    %2 = vector.broadcast %1 : vector<1x1x256xf32> to vector<1x4x256xf32>
    %3 = arith.mulf %0, %2 : vector<1x4x256xf32>
    %c0_5 = arith.constant 0 : index
    %c0_6 = arith.constant 0 : index
    %c0_7 = arith.constant 0 : index
    %4 = vector.load %arg4[%c0_5, %c0_6, %c0_7] : memref<1x4x256xf32, #tpu.memory_space<vmem>>, vector<1x4x256xf32>
    tpu.vector_store %arg4[%c0_5, %c0_6, %c0_7], %3 {strides = array<i32>} : memref<1x4x256xf32, #tpu.memory_space<vmem>>, vector<1x4x256xf32>,
    return
  }
  func.func @transform_0(%arg0: i32, %arg1: i32) -> (i32, i32, i32) {
    %c0_i32 = arith.constant 0 : i32
    %c0_i32_0 = arith.constant 0 : i32
    return %arg0, %arg1, %c0_i32 : i32, i32, i32
  }
  func.func @transform_1(%arg0: i32, %arg1: i32) -> (i32, i32, i32) {
    %c0_i32 = arith.constant 0 : i32
    %c0_i32_0 = arith.constant 0 : i32
    %c0_i32_1 = arith.constant 0 : i32
    return %arg0, %c0_i32, %c0_i32_0 : i32, i32, i32
  }
  func.func @transform_2(%arg0: i32, %arg1: i32) -> (i32, i32, i32) {
    %c0_i32 = arith.constant 0 : i32
    %c0_i32_0 = arith.constant 0 : i32
    return %arg0, %arg1, %c0_i32 : i32, i32, i32
  }
}

</mosaic_0001>

<bundles_post_ra>
// kernel: _dropblock_forward.3
= control target key start
LH: loop header
LB: loop body
LE: loop exit
PB: predicated region body
PF: predicated region fallthrough
CT: control target
= control target key end

     0   :  { %s389_s9 = smov 0   ;;  %s391_s10 = smov 0   ;;  %s418_s0 = inlined_call_operand.vmem [shape: f32[2,4,256], index: 0, kind: input, shape index: {}]   ;;  %s419_s1 = inlined_call_operand.vmem [shape: f32[2,1,256], index: 1, kind: input, shape index: {}]   ;;  %s420_s2 = inlined_call_operand.vmem [shape: f32[2,4,256], index: 2, kind: output, shape index: {}]  }
   0x1   :  { %s393_s11 = smov 0  }
   0x2 LB: > { %s24_s12 = sadd.s32 1, %s368_s10  ;;  %p316_p0 = scmp.ge.s32.totalorder %s372_s11, 1  ;;  %s372_s11 = sphi %s393_s11, %s12_s11   ;;  %s368_s10 = sphi %s391_s10, %s422_s10   ;;  %s364_s9 = sphi %s389_s9, %s421_s9  }
   0x3   : > { %p26_p1 = scmp.ge.s32.totalorder %s24_s12, 2  ;;  %p141_p2 = scmp.lt.s32.totalorder %s372_s11, 3 }
   0x5   : > { %s424_s12 = smov (%p26_p1, %s24_s12), 0  ;;  %p142_p3 = pnand %p316_p0, %p141_p2 }
   0x6   : > { %p175_p4 = scmp.lt.s32.totalorder (!%p142_p3), %s364_s9, 1 }
   0x7   : > { %145 = sbr.rel (%p142_p3) target bundleno = 24 (0x18), region = 28 }
   0xc   : > { %s426_s9 = smov (!%p175_p4, %s364_s9), 1  ;;  %vm203_vm0 = vcmask 1043456  }
   0xd   : > { %s324_s13 = sshll.u32 %s426_s9, 3  ;;  %s319_s14 = sshll.u32 %s426_s9, 1 }
   0xe   : > { %s187_s17 = scalar_lea.vmem %s419_s1, %s319_s14  ;;  %s183_s20 = scalar_lea.vmem %s418_s0, %s324_s13 }
   0xf   : > { %v198_v0 = vld [vmem:[%s187_s17] sm:$0x3]  ;;  %s196_s23 = scalar_lea.vmem %s420_s2, %s324_s13 }
  0x10   : > { %v200_v1 = vperm.slane %v198_v0, 0  ;;  %v201_v2 = vperm.slane %v198_v0, 1  ;;  %v197_v3 = vld [vmem:[%s183_s20] sm:$0xff] }
  0x12   : > { %v202_v4 = vrot.slane %v201_v2, 4 }
  0x14   : > { %v204_v5 = vsel %vm203_vm0, %v200_v1, %v202_v4 }
  0x15   : > { %v206_v6 = vmul.f32 %v204_v5, %v197_v3 }
  0x17   : > { %207 = vst [vmem:[%s196_s23] sm:$0xff] %v206_v6 }
  0x18 PF: > { %s12_s11 = sadd.s32 1, %s372_s11   ;;  %s421_s9 = smov %s368_s10 }
  0x19   : > { %p9_p5 = scmp.ge.s32.totalorder %s12_s11, 4   ;;  %s422_s10 = smov %s424_s12 }
  0x1b   :  { %11 = sbr.rel (!%p9_p5) target bundleno = 2 (0x2), region = 61 }

// kernel: _dropblock_forward.2
= control target key start
LH: loop header
LB: loop body
LE: loop exit
PB: predicated region body
PF: predicated region fallthrough
CT: control target
= control target key end

     0   :  { %vm34_vm0 = vcmask 1046528   ;;  %vm47_vm3 = vcmask 1040384   ;;  %v200_v5 = vmov 0.0   ;;  %vm101_vm6 = vcmask 7168   ;;  %s203_s20 = smov 1.0   ;;  %s270_s0 = inlined_call_operand.vmem [shape: f32[2,16,16], index: 0, kind: input, shape index: {}]   ;;  %s271_s1 = inlined_call_operand.<no memory space> [shape: f32[1], index: 1, kind: input, shape index: {}]   ;;  %s272_s2 = inlined_call_operand.vmem [shape: f32[2,16,16], index: 2, kind: output, shape index: {}]  }
   0x1   :  { %v15_v0 = vld [vmem:[%s270_s0 + $0x10] sm:$0xff]  ;;  %v16_v1 = vld [vmem:[%s270_s0 + $0x18] sm:$0xff]  ;;  %v17_v2 = vstv %s271_s1  ;;  %v13_v3 = vld [vmem:[%s270_s0] sm:$0xff]  ;;  %s202_s1 = smov 1   ;;  %vm84_vm7 = vcmask 121856   ;;  %vm118_vm8 = vcmask 130048  }
   0x2   :  { %vm20_vm1 = vcmp.lt.f32.partialorder %v15_v0, %v17_v2  ;;  %vm21_vm2 = vcmp.lt.f32.partialorder %v16_v1, %v17_v2  ;;  %v14_v4 = vld [vmem:[%s270_s0 + $0x8] sm:$0xff]  ;;  %vm18_vm4 = vcmp.lt.f32.partialorder %v13_v3, %v17_v2  ;;  %s201_s0 = smov 127  }
   0x3   :  { %v168_v6 = vsel %vm20_vm1, 1.0, %v200_v5  ;;  %v169_v7 = vsel %vm21_vm2, 1.0, %v200_v5  ;;  %vm19_vm5 = vcmp.lt.f32.partialorder %v14_v4, %v17_v2  ;;  %v166_v8 = vsel %vm18_vm4, 1.0, %v200_v5 }
   0x4   :  { %v38_v9 = vrot.slane %v168_v6, 1  ;;  %v39_v10 = vrot.slane %v169_v7, 1  ;;  %v51_v11 = vrot.slane %v168_v6, 7  ;;  %v52_v12 = vrot.slane %v169_v7, 7 }
   0x5   :  { %v167_v13 = vsel %vm19_vm5, 1.0, %v200_v5  ;;  %v35_v14 = vrot.slane %v166_v8, 1  ;;  %v48_v15 = vrot.slane %v166_v8, 7 }
   0x6   :  { %v40_v16 = vsel %vm34_vm0, %v38_v9, %v39_v10  ;;  %v46_v17 = vsel %vm34_vm0, %v39_v10, 0.0  ;;  %v53_v18 = vsel %vm47_vm3, %v51_v11, %v52_v12  ;;  %v59_v19 = vsel %vm47_vm3, 0.0, %v51_v11 }
   0x7   :  { %v62_v20 = vmax.f32 %v40_v16, %v59_v19  ;;  %v63_v21 = vmax.f32 %v46_v17, %v53_v18  ;;  %v36_v22 = vrot.slane %v167_v13, 1  ;;  %v49_v23 = vrot.slane %v167_v13, 7 }
   0x8   :  { %v58_v24 = vsel %vm47_vm3, 0.0, %v48_v15 }
   0x9   :  { %v66_v25 = vmax.f32 %v168_v6, %v62_v20  ;;  %v67_v26 = vmax.f32 %v169_v7, %v63_v21  ;;  %v37_v27 = vsel %vm34_vm0, %v35_v14, %v36_v22  ;;  %v45_v28 = vsel %vm34_vm0, %v36_v22, 0.0 }
   0xa   :  { %v50_v29 = vsel %vm47_vm3, %v48_v15, %v49_v23  ;;  %v60_v30 = vmax.f32 %v37_v27, %v58_v24 }
   0xb   :  { %v188_v31 = vpack.i.bf16 %v67_v26, %v66_v25  ;;  %v61_v32 = vmax.f32 %v45_v28, %v50_v29 }
   0xc   :  { %v64_v33 = vmax.f32 %v166_v8, %v60_v30 }
   0xd   :  { %189 = vrot.lane.b32.xlu1 %v188_v31, %s201_s0  ;;  %v65_v34 = vmax.f32 %v167_v13, %v61_v32 }
   0xf   :  { %v178_v35 = vpack.i.bf16 %v65_v34, %v64_v33 }
  0x11   :  { %179 = vrot.lane.b32.xlu0 %v178_v35, %s201_s0 }
  0x15   :  { %194 = vrot.lane.b32.xlu1 %v188_v31, %s202_s1 }
  0x19   :  { %184 = vrot.lane.b32.xlu0 %v178_v35, %s202_s1 }
  0x7f   :  { %v190_v36 = vpop.permute.xlu1 %189 }
  0x80   :  { %v191_v38 = vunpack.i.l.bf16 %v190_v36  ;;  %v192_v40 = vunpack.i.h.bf16 %v190_v36 }
  0x82   :  { %v87_v43 = vsel %vm84_vm7, %v191_v38, 0.0  ;;  %v88_v50 = vsel %vm84_vm7, %v192_v40, 0.0 }
  0x83   :  { %v180_v37 = vpop.permute.xlu0 %179 }
  0x84   :  { %v182_v44 = vunpack.i.h.bf16 %v180_v37  ;;  %v181_v45 = vunpack.i.l.bf16 %v180_v37 }
  0x86   :  { %v86_v54 = vsel %vm84_vm7, %v182_v44, 0.0  ;;  %v85_v55 = vsel %vm84_vm7, %v181_v45, 0.0 }
  0x87   :  { %v195_v39 = vpop.permute.xlu1 %194 }
  0x88   :  { %v197_v41 = vunpack.i.h.bf16 %v195_v39  ;;  %v196_v42 = vunpack.i.l.bf16 %v195_v39 }
  0x8a   :  { %v105_v46 = vsel %vm101_vm6, 0.0, %v197_v41  ;;  %v104_v47 = vsel %vm101_vm6, 0.0, %v196_v42 }
  0x8b   :  { %v108_v48 = vmax.f32 %v87_v43, %v104_v47  ;;  %v185_v49 = vpop.permute.xlu0 %184  ;;  %v109_v53 = vmax.f32 %v88_v50, %v105_v46 }
  0x8c   :  { %v187_v51 = vunpack.i.h.bf16 %v185_v49  ;;  %v186_v52 = vunpack.i.l.bf16 %v185_v49 }
  0x8d   :  { %v112_v60 = vmax.f32 %v66_v25, %v108_v48  ;;  %v113_v63 = vmax.f32 %v67_v26, %v109_v53 }
  0x8e   :  { %v103_v56 = vsel %vm101_vm6, 0.0, %v187_v51  ;;  %v102_v57 = vsel %vm101_vm6, 0.0, %v186_v52 }
  0x8f   :  { %v106_v58 = vmax.f32 %v85_v55, %v102_v57  ;;  %v107_v59 = vmax.f32 %v86_v54, %v103_v56  ;;  %v116_v2 = vsub.f32 1.0, %v112_v60  ;;  %v117_v3 = vsub.f32 1.0, %v113_v63 }
  0x91   :  { %v110_v61 = vmax.f32 %v64_v33, %v106_v58  ;;  %v111_v62 = vmax.f32 %v65_v34, %v107_v59  ;;  %v122_v7 = vsel %vm118_vm8, %v116_v2, 0.0  ;;  %v124_v9 = vsel %vm118_vm8, %v117_v3, 0.0 }
  0x93   :  { %v114_v0 = vsub.f32 1.0, %v110_v61  ;;  %v115_v1 = vsub.f32 1.0, %v111_v62 }
  0x95   :  { %v119_v4 = vsel %vm118_vm8, %v114_v0, 0.0  ;;  %v120_v5 = vsel %vm118_vm8, %v115_v1, 0.0 }
  0x96   :  { %v121_v6 = vadd.f32 %v120_v5, %v119_v4 }
  0x98   :  { %v123_v8 = vadd.f32 %v122_v7, %v121_v6 }
  0x9a   :  { %v125_v10 = vadd.f32 %v124_v9, %v123_v8 }
  0x9c   :  { %126 = vadd.xlane.f32.xlu2 %v125_v10 }
 0x10f   :  { %v127_v11 = vpop.xlane.xlu2 %126 }
 0x110   :  { %v128_v12 = vrot.slane %v127_v11, 4 }
 0x112   :  { %v129_v13 = vadd.f32 %v128_v12, %v127_v11 }
 0x114   :  { %v130_v14 = vrot.slane %v129_v13, 2 }
 0x116   :  { %v131_v15 = vadd.f32 %v130_v14, %v129_v13 }
 0x118   :  { %v132_v16 = vrot.slane %v131_v15, 1 }
 0x11a   :  { %v133_v17 = vadd.f32 %v132_v16, %v131_v15 }
 0x11c   :  { %170 = vpush %v133_v17 }
 0x14d   :  { %s171_s19 = spop %170 }
 0x14e   :  { %s135_s21 = smax.f32 %s203_s20, %s171_s19 }
 0x14f   :  { %v136_v18 = vstv %s135_s21 }
 0x150   :  { %198 = vrcp.f32 %v136_v18  ;;  %v148_v22 = vand.u32 2147483648, %v136_v18  ;;  %v146_v24 = vand.u32 2147483647, %v136_v18  ;;  %vm142_vm10 = vweird.f32 %v136_v18 }
 0x152   :  { %v149_v26 = vor.u32 1.1754944e-38, %v148_v22  ;;  %vm147_vm12 = vcmp.eq.f32.partialorder %v146_v24, 8.507059e+37 }
 0x156   :  { %v199_v19 = vpop.eup %198 }
 0x157   :  { %v138_v20 = vmul.f32 %v199_v19, %v136_v18  ;;  %vm143_vm9 = vweird.f32 %v199_v19 }
 0x158   :  { %vm144_vm11 = vmor %vm142_vm10, %vm143_vm9 }
 0x159   :  { %v139_v21 = vsub.f32 1.0, %v138_v20 }
 0x15b   :  { %v140_v23 = vmul.f32 %v199_v19, %v139_v21 }
 0x15d   :  { %v141_v25 = vadd.f32 %v199_v19, %v140_v23 }
 0x15f   :  { %v145_v27 = vsel %vm144_vm11, %v199_v19, %v141_v25 }
 0x160   :  { %v150_v28 = vsel %vm147_vm12, %v149_v26, %v145_v27 }
 0x161   :  { %172 = vpush %v150_v28 }
 0x192   :  { %s173_s22 = spop %172 }
 0x193   :  { %s152_s23 = smul.f32 512.0, %s173_s22 }
 0x195   :  { %v153_v29 = vstv %s152_s23 }
 0x196   :  { %v154_v30 = vmul.f32 %v153_v29, %v114_v0  ;;  %v155_v31 = vmul.f32 %v153_v29, %v115_v1  ;;  %v156_v32 = vmul.f32 %v153_v29, %v116_v2  ;;  %v157_v33 = vmul.f32 %v153_v29, %v117_v3 }
 0x198   :  { %158 = vst.msk [vmem:[%s272_s2] sm:$0xff] %vm118_vm8, %v154_v30 }
 0x199   :  { %159 = vst.msk [vmem:[%s272_s2 + $0x8] sm:$0xff] %vm118_vm8, %v155_v31 }
 0x19a   :  { %160 = vst.msk [vmem:[%s272_s2 + $0x10] sm:$0xff] %vm118_vm8, %v156_v32 }
 0x19b   :  { %161 = vst.msk [vmem:[%s272_s2 + $0x18] sm:$0xff] %vm118_vm8, %v157_v33 }

</bundles_post_ra>
